<compile_context>
chip_gen: v5e
topology: v5e:2x2
jax: 0.10.0
libtpu: 0.0.40
codegen_flags: <defaults>
</compile_context>

<pallas_src>
import math

import jax
import jax.numpy as jnp
from jax.experimental import pallas as pl
from jax.experimental.pallas import tpu as pltpu


def _linear_sub_kernel(x2_ref, w_ref, b_ref, x1_ref, o_ref):
    # x2_ref : (B, K)    SMEM  (scalar reads)
    # w_ref  : (K, N)    VMEM
    # b_ref  : (1, N)    VMEM
    # x1_ref : (G, B*N)  VMEM  (lane-dense, aliased with o_ref's HBM buffer)
    # o_ref  : (G, B*N)  VMEM
    B, K = x2_ref.shape
    bias = b_ref[...]                                  # (1, N)

    # v1[b, n] = sum_k x2[b, k] * w[k, n] + b[n]
    # Exact f32 VPU arithmetic: K statically-unrolled scalar*row MACs per
    # batch element; w rows loaded once per k and reused across batches.
    acc = [bias for _ in range(B)]
    for k in range(K):                                 # K = 16, static unroll
        wk = w_ref[k:k + 1, :]                         # (1, N) sublane-row load
        for bi in range(B):                            # B = 2, static unroll
            acc[bi] = acc[bi] + x2_ref[bi, k] * wk     # SMEM scalar * vector

    # Lane-dense (1, B*N) row: v1_flat[0, b*N + n] = v1[b, n]
    v1 = jnp.concatenate(acc, axis=1)                  # (1, B*N)

    # v2 = v1 - x1 : broadcast the single v1 row over the G sublanes.
    # Single full-width unmasked store.
    o_ref[...] = (v1 - x1_ref[...]).astype(o_ref.dtype)


@jax.jit
def model_forward(x1, x2, w, b):
    """x1: (*lead, B, N), x2: (B, K), w: (K, N), b: (N,)."""
    B, K = x2.shape
    N = w.shape[1]
    lead = x1.shape[:-2]
    assert x1.shape[-2:] == (B, N), "x1 trailing dims must broadcast with (B, N)"
    G = math.prod(lead) if lead else 1
    BN = B * N  # 128 -> exactly one vreg row (lane-dense)

    # Pure metadata reshapes only (no materializing repeat/tile in the wrapper).
    x1_flat = x1.reshape(G, BN)
    b2 = b.reshape(1, N)

    smem = pl.BlockSpec(memory_space=pltpu.MemorySpace.SMEM)
    vmem = pl.BlockSpec(memory_space=pltpu.MemorySpace.VMEM)

    out_flat = pl.pallas_call(
        _linear_sub_kernel,
        out_shape=jax.ShapeDtypeStruct((G, BN), x1_flat.dtype),
        in_specs=[smem, vmem, vmem, vmem],
        out_specs=vmem,
        # out = v1 - x1: write back in place of x1 (XLA inserts a copy if x1
        # is not donated, so this is always safe and free when it is).
        input_output_aliases={3: 0},
    )(x2, w, b2, x1_flat)
    return out_flat.reshape(*lead, B, N)


if __name__ == "__main__":
    key = jax.random.PRNGKey(0)
    k1, k2, k3, k4 = jax.random.split(key, 4)

    B, K, N = 2, 16, 64            # Linear(16, 64), batch 2 (matches x2 = (2, 16))
    lead = (1, 4)                  # small leading dims so (B, N) broadcasts cleanly

    # Deterministic parameter init (PyTorch Linear-style uniform bound 1/sqrt(K))
    bound = 1.0 / jnp.sqrt(jnp.float32(K))
    w = jax.random.uniform(k1, (K, N), jnp.float32, -bound, bound)
    b = jax.random.uniform(k2, (N,), jnp.float32, -bound, bound)

    x2 = jax.random.normal(k3, (B, K), jnp.float32)
    x1 = jax.random.normal(k4, (*lead, B, N), jnp.float32)

    # Plain-JAX reference, built with exact f32 elementwise ops (matches the
    # kernel's VPU arithmetic; avoids XLA matmul default-precision mismatch).
    # Computed before the (aliased) kernel runs.
    ref_v1 = jnp.sum(x2[:, :, None] * w[None, :, :], axis=1) + b   # (B, N)
    ref = ref_v1[None, None, :, :] - x1

    out = jax.block_until_ready(model_forward(x1, x2, w, b))

    assert out.shape == (*lead, B, N)
    assert jnp.allclose(out, ref, atol=1e-5, rtol=1e-5)

    print("KERNEL_OK")
</pallas_src>

<mosaic_0001>
module attributes {stable_mosaic.version = 11 : i64} {
  func.func @_linear_sub_kernel(%arg0: memref<2x16xf32, #tpu.memory_space<smem>>, %arg1: memref<16x64xf32, #tpu.memory_space<vmem>>, %arg2: memref<1x64xf32, #tpu.memory_space<vmem>>, %arg3: memref<4x128xf32, #tpu.memory_space<vmem>>, %arg4: memref<4x128xf32, #tpu.memory_space<vmem>>) attributes {dimension_semantics = [], scalar_prefetch = 0 : i64, scratch_operands = 0 : i64, tpu.core_type = #tpu.core_type<tc>} {
    %c0 = arith.constant 0 : index
    %c0_0 = arith.constant 0 : index
    %0 = vector.load %arg2[%c0, %c0_0] : memref<1x64xf32, #tpu.memory_space<vmem>>, vector<1x64xf32>
    %c0_1 = arith.constant 0 : index
    %c0_2 = arith.constant 0 : index
    %1 = vector.load %arg1[%c0_1, %c0_2] : memref<16x64xf32, #tpu.memory_space<vmem>>, vector<1x64xf32>
    %c0_3 = arith.constant 0 : index
    %c0_4 = arith.constant 0 : index
    %2 = memref.load %arg0[%c0_3, %c0_4] : memref<2x16xf32, #tpu.memory_space<smem>>
    %3 = vector.broadcast %2 : f32 to vector<1x64xf32>
    %4 = arith.mulf %3, %1 : vector<1x64xf32>
    %5 = arith.addf %0, %4 : vector<1x64xf32>
    %c1 = arith.constant 1 : index
    %c0_5 = arith.constant 0 : index
    %6 = memref.load %arg0[%c1, %c0_5] : memref<2x16xf32, #tpu.memory_space<smem>>
    %7 = vector.broadcast %6 : f32 to vector<1x64xf32>
    %8 = arith.mulf %7, %1 : vector<1x64xf32>
    %9 = arith.addf %0, %8 : vector<1x64xf32>
    %c1_6 = arith.constant 1 : index
    %c0_7 = arith.constant 0 : index
    %10 = vector.load %arg1[%c1_6, %c0_7] : memref<16x64xf32, #tpu.memory_space<vmem>>, vector<1x64xf32>
    %c0_8 = arith.constant 0 : index
    %c1_9 = arith.constant 1 : index
    %11 = memref.load %arg0[%c0_8, %c1_9] : memref<2x16xf32, #tpu.memory_space<smem>>
    %12 = vector.broadcast %11 : f32 to vector<1x64xf32>
    %13 = arith.mulf %12, %10 : vector<1x64xf32>
    %14 = arith.addf %5, %13 : vector<1x64xf32>
    %c1_10 = arith.constant 1 : index
    %c1_11 = arith.constant 1 : index
    %15 = memref.load %arg0[%c1_10, %c1_11] : memref<2x16xf32, #tpu.memory_space<smem>>
    %16 = vector.broadcast %15 : f32 to vector<1x64xf32>
    %17 = arith.mulf %16, %10 : vector<1x64xf32>
    %18 = arith.addf %9, %17 : vector<1x64xf32>
    %c2 = arith.constant 2 : index
    %c0_12 = arith.constant 0 : index
    %19 = vector.load %arg1[%c2, %c0_12] : memref<16x64xf32, #tpu.memory_space<vmem>>, vector<1x64xf32>
    %c0_13 = arith.constant 0 : index
    %c2_14 = arith.constant 2 : index
    %20 = memref.load %arg0[%c0_13, %c2_14] : memref<2x16xf32, #tpu.memory_space<smem>>
    %21 = vector.broadcast %20 : f32 to vector<1x64xf32>
    %22 = arith.mulf %21, %19 : vector<1x64xf32>
    %23 = arith.addf %14, %22 : vector<1x64xf32>
    %c1_15 = arith.constant 1 : index
    %c2_16 = arith.constant 2 : index
    %24 = memref.load %arg0[%c1_15, %c2_16] : memref<2x16xf32, #tpu.memory_space<smem>>
    %25 = vector.broadcast %24 : f32 to vector<1x64xf32>
    %26 = arith.mulf %25, %19 : vector<1x64xf32>
    %27 = arith.addf %18, %26 : vector<1x64xf32>
    %c3 = arith.constant 3 : index
    %c0_17 = arith.constant 0 : index
    %28 = vector.load %arg1[%c3, %c0_17] : memref<16x64xf32, #tpu.memory_space<vmem>>, vector<1x64xf32>
    %c0_18 = arith.constant 0 : index
    %c3_19 = arith.constant 3 : index
    %29 = memref.load %arg0[%c0_18, %c3_19] : memref<2x16xf32, #tpu.memory_space<smem>>
    %30 = vector.broadcast %29 : f32 to vector<1x64xf32>
    %31 = arith.mulf %30, %28 : vector<1x64xf32>
    %32 = arith.addf %23, %31 : vector<1x64xf32>
    %c1_20 = arith.constant 1 : index
    %c3_21 = arith.constant 3 : index
    %33 = memref.load %arg0[%c1_20, %c3_21] : memref<2x16xf32, #tpu.memory_space<smem>>
    %34 = vector.broadcast %33 : f32 to vector<1x64xf32>
    %35 = arith.mulf %34, %28 : vector<1x64xf32>
    %36 = arith.addf %27, %35 : vector<1x64xf32>
    %c4 = arith.constant 4 : index
    %c0_22 = arith.constant 0 : index
    %37 = vector.load %arg1[%c4, %c0_22] : memref<16x64xf32, #tpu.memory_space<vmem>>, vector<1x64xf32>
    %c0_23 = arith.constant 0 : index
    %c4_24 = arith.constant 4 : index
    %38 = memref.load %arg0[%c0_23, %c4_24] : memref<2x16xf32, #tpu.memory_space<smem>>
    %39 = vector.broadcast %38 : f32 to vector<1x64xf32>
    %40 = arith.mulf %39, %37 : vector<1x64xf32>
    %41 = arith.addf %32, %40 : vector<1x64xf32>
    %c1_25 = arith.constant 1 : index
    %c4_26 = arith.constant 4 : index
    %42 = memref.load %arg0[%c1_25, %c4_26] : memref<2x16xf32, #tpu.memory_space<smem>>
    %43 = vector.broadcast %42 : f32 to vector<1x64xf32>
    %44 = arith.mulf %43, %37 : vector<1x64xf32>
    %45 = arith.addf %36, %44 : vector<1x64xf32>
    %c5 = arith.constant 5 : index
    %c0_27 = arith.constant 0 : index
    %46 = vector.load %arg1[%c5, %c0_27] : memref<16x64xf32, #tpu.memory_space<vmem>>, vector<1x64xf32>
    %c0_28 = arith.constant 0 : index
    %c5_29 = arith.constant 5 : index
    %47 = memref.load %arg0[%c0_28, %c5_29] : memref<2x16xf32, #tpu.memory_space<smem>>
    %48 = vector.broadcast %47 : f32 to vector<1x64xf32>
    %49 = arith.mulf %48, %46 : vector<1x64xf32>
    %50 = arith.addf %41, %49 : vector<1x64xf32>
    %c1_30 = arith.constant 1 : index
    %c5_31 = arith.constant 5 : index
    %51 = memref.load %arg0[%c1_30, %c5_31] : memref<2x16xf32, #tpu.memory_space<smem>>
    %52 = vector.broadcast %51 : f32 to vector<1x64xf32>
    %53 = arith.mulf %52, %46 : vector<1x64xf32>
    %54 = arith.addf %45, %53 : vector<1x64xf32>
    %c6 = arith.constant 6 : index
    %c0_32 = arith.constant 0 : index
    %55 = vector.load %arg1[%c6, %c0_32] : memref<16x64xf32, #tpu.memory_space<vmem>>, vector<1x64xf32>
    %c0_33 = arith.constant 0 : index
    %c6_34 = arith.constant 6 : index
    %56 = memref.load %arg0[%c0_33, %c6_34] : memref<2x16xf32, #tpu.memory_space<smem>>
    %57 = vector.broadcast %56 : f32 to vector<1x64xf32>
    %58 = arith.mulf %57, %55 : vector<1x64xf32>
    %59 = arith.addf %50, %58 : vector<1x64xf32>
    %c1_35 = arith.constant 1 : index
    %c6_36 = arith.constant 6 : index
    %60 = memref.load %arg0[%c1_35, %c6_36] : memref<2x16xf32, #tpu.memory_space<smem>>
    %61 = vector.broadcast %60 : f32 to vector<1x64xf32>
    %62 = arith.mulf %61, %55 : vector<1x64xf32>
    %63 = arith.addf %54, %62 : vector<1x64xf32>
    %c7 = arith.constant 7 : index
    %c0_37 = arith.constant 0 : index
    %64 = vector.load %arg1[%c7, %c0_37] : memref<16x64xf32, #tpu.memory_space<vmem>>, vector<1x64xf32>
    %c0_38 = arith.constant 0 : index
    %c7_39 = arith.constant 7 : index
    %65 = memref.load %arg0[%c0_38, %c7_39] : memref<2x16xf32, #tpu.memory_space<smem>>
    %66 = vector.broadcast %65 : f32 to vector<1x64xf32>
    %67 = arith.mulf %66, %64 : vector<1x64xf32>
    %68 = arith.addf %59, %67 : vector<1x64xf32>
    %c1_40 = arith.constant 1 : index
    %c7_41 = arith.constant 7 : index
    %69 = memref.load %arg0[%c1_40, %c7_41] : memref<2x16xf32, #tpu.memory_space<smem>>
    %70 = vector.broadcast %69 : f32 to vector<1x64xf32>
    %71 = arith.mulf %70, %64 : vector<1x64xf32>
    %72 = arith.addf %63, %71 : vector<1x64xf32>
    %c8 = arith.constant 8 : index
    %c0_42 = arith.constant 0 : index
    %73 = vector.load %arg1[%c8, %c0_42] : memref<16x64xf32, #tpu.memory_space<vmem>>, vector<1x64xf32>
    %c0_43 = arith.constant 0 : index
    %c8_44 = arith.constant 8 : index
    %74 = memref.load %arg0[%c0_43, %c8_44] : memref<2x16xf32, #tpu.memory_space<smem>>
    %75 = vector.broadcast %74 : f32 to vector<1x64xf32>
    %76 = arith.mulf %75, %73 : vector<1x64xf32>
    %77 = arith.addf %68, %76 : vector<1x64xf32>
    %c1_45 = arith.constant 1 : index
    %c8_46 = arith.constant 8 : index
    %78 = memref.load %arg0[%c1_45, %c8_46] : memref<2x16xf32, #tpu.memory_space<smem>>
    %79 = vector.broadcast %78 : f32 to vector<1x64xf32>
    %80 = arith.mulf %79, %73 : vector<1x64xf32>
    %81 = arith.addf %72, %80 : vector<1x64xf32>
    %c9 = arith.constant 9 : index
    %c0_47 = arith.constant 0 : index
    %82 = vector.load %arg1[%c9, %c0_47] : memref<16x64xf32, #tpu.memory_space<vmem>>, vector<1x64xf32>
    %c0_48 = arith.constant 0 : index
    %c9_49 = arith.constant 9 : index
    %83 = memref.load %arg0[%c0_48, %c9_49] : memref<2x16xf32, #tpu.memory_space<smem>>
    %84 = vector.broadcast %83 : f32 to vector<1x64xf32>
    %85 = arith.mulf %84, %82 : vector<1x64xf32>
    %86 = arith.addf %77, %85 : vector<1x64xf32>
    %c1_50 = arith.constant 1 : index
    %c9_51 = arith.constant 9 : index
    %87 = memref.load %arg0[%c1_50, %c9_51] : memref<2x16xf32, #tpu.memory_space<smem>>
    %88 = vector.broadcast %87 : f32 to vector<1x64xf32>
    %89 = arith.mulf %88, %82 : vector<1x64xf32>
    %90 = arith.addf %81, %89 : vector<1x64xf32>
    %c10 = arith.constant 10 : index
    %c0_52 = arith.constant 0 : index
    %91 = vector.load %arg1[%c10, %c0_52] : memref<16x64xf32, #tpu.memory_space<vmem>>, vector<1x64xf32>
    %c0_53 = arith.constant 0 : index
    %c10_54 = arith.constant 10 : index
    %92 = memref.load %arg0[%c0_53, %c10_54] : memref<2x16xf32, #tpu.memory_space<smem>>
    %93 = vector.broadcast %92 : f32 to vector<1x64xf32>
    %94 = arith.mulf %93, %91 : vector<1x64xf32>
    %95 = arith.addf %86, %94 : vector<1x64xf32>
    %c1_55 = arith.constant 1 : index
    %c10_56 = arith.constant 10 : index
    %96 = memref.load %arg0[%c1_55, %c10_56] : memref<2x16xf32, #tpu.memory_space<smem>>
    %97 = vector.broadcast %96 : f32 to vector<1x64xf32>
    %98 = arith.mulf %97, %91 : vector<1x64xf32>
    %99 = arith.addf %90, %98 : vector<1x64xf32>
    %c11 = arith.constant 11 : index
    %c0_57 = arith.constant 0 : index
    %100 = vector.load %arg1[%c11, %c0_57] : memref<16x64xf32, #tpu.memory_space<vmem>>, vector<1x64xf32>
    %c0_58 = arith.constant 0 : index
    %c11_59 = arith.constant 11 : index
    %101 = memref.load %arg0[%c0_58, %c11_59] : memref<2x16xf32, #tpu.memory_space<smem>>
    %102 = vector.broadcast %101 : f32 to vector<1x64xf32>
    %103 = arith.mulf %102, %100 : vector<1x64xf32>
    %104 = arith.addf %95, %103 : vector<1x64xf32>
    %c1_60 = arith.constant 1 : index
    %c11_61 = arith.constant 11 : index
    %105 = memref.load %arg0[%c1_60, %c11_61] : memref<2x16xf32, #tpu.memory_space<smem>>
    %106 = vector.broadcast %105 : f32 to vector<1x64xf32>
    %107 = arith.mulf %106, %100 : vector<1x64xf32>
    %108 = arith.addf %99, %107 : vector<1x64xf32>
    %c12 = arith.constant 12 : index
    %c0_62 = arith.constant 0 : index
    %109 = vector.load %arg1[%c12, %c0_62] : memref<16x64xf32, #tpu.memory_space<vmem>>, vector<1x64xf32>
    %c0_63 = arith.constant 0 : index
    %c12_64 = arith.constant 12 : index
    %110 = memref.load %arg0[%c0_63, %c12_64] : memref<2x16xf32, #tpu.memory_space<smem>>
    %111 = vector.broadcast %110 : f32 to vector<1x64xf32>
    %112 = arith.mulf %111, %109 : vector<1x64xf32>
    %113 = arith.addf %104, %112 : vector<1x64xf32>
    %c1_65 = arith.constant 1 : index
    %c12_66 = arith.constant 12 : index
    %114 = memref.load %arg0[%c1_65, %c12_66] : memref<2x16xf32, #tpu.memory_space<smem>>
    %115 = vector.broadcast %114 : f32 to vector<1x64xf32>
    %116 = arith.mulf %115, %109 : vector<1x64xf32>
    %117 = arith.addf %108, %116 : vector<1x64xf32>
    %c13 = arith.constant 13 : index
    %c0_67 = arith.constant 0 : index
    %118 = vector.load %arg1[%c13, %c0_67] : memref<16x64xf32, #tpu.memory_space<vmem>>, vector<1x64xf32>
    %c0_68 = arith.constant 0 : index
    %c13_69 = arith.constant 13 : index
    %119 = memref.load %arg0[%c0_68, %c13_69] : memref<2x16xf32, #tpu.memory_space<smem>>
    %120 = vector.broadcast %119 : f32 to vector<1x64xf32>
    %121 = arith.mulf %120, %118 : vector<1x64xf32>
    %122 = arith.addf %113, %121 : vector<1x64xf32>
    %c1_70 = arith.constant 1 : index
    %c13_71 = arith.constant 13 : index
    %123 = memref.load %arg0[%c1_70, %c13_71] : memref<2x16xf32, #tpu.memory_space<smem>>
    %124 = vector.broadcast %123 : f32 to vector<1x64xf32>
    %125 = arith.mulf %124, %118 : vector<1x64xf32>
    %126 = arith.addf %117, %125 : vector<1x64xf32>
    %c14 = arith.constant 14 : index
    %c0_72 = arith.constant 0 : index
    %127 = vector.load %arg1[%c14, %c0_72] : memref<16x64xf32, #tpu.memory_space<vmem>>, vector<1x64xf32>
    %c0_73 = arith.constant 0 : index
    %c14_74 = arith.constant 14 : index
    %128 = memref.load %arg0[%c0_73, %c14_74] : memref<2x16xf32, #tpu.memory_space<smem>>
    %129 = vector.broadcast %128 : f32 to vector<1x64xf32>
    %130 = arith.mulf %129, %127 : vector<1x64xf32>
    %131 = arith.addf %122, %130 : vector<1x64xf32>
    %c1_75 = arith.constant 1 : index
    %c14_76 = arith.constant 14 : index
    %132 = memref.load %arg0[%c1_75, %c14_76] : memref<2x16xf32, #tpu.memory_space<smem>>
    %133 = vector.broadcast %132 : f32 to vector<1x64xf32>
    %134 = arith.mulf %133, %127 : vector<1x64xf32>
    %135 = arith.addf %126, %134 : vector<1x64xf32>
    %c15 = arith.constant 15 : index
    %c0_77 = arith.constant 0 : index
    %136 = vector.load %arg1[%c15, %c0_77] : memref<16x64xf32, #tpu.memory_space<vmem>>, vector<1x64xf32>
    %c0_78 = arith.constant 0 : index
    %c15_79 = arith.constant 15 : index
    %137 = memref.load %arg0[%c0_78, %c15_79] : memref<2x16xf32, #tpu.memory_space<smem>>
    %138 = vector.broadcast %137 : f32 to vector<1x64xf32>
    %139 = arith.mulf %138, %136 : vector<1x64xf32>
    %140 = arith.addf %131, %139 : vector<1x64xf32>
    %c1_80 = arith.constant 1 : index
    %c15_81 = arith.constant 15 : index
    %141 = memref.load %arg0[%c1_80, %c15_81] : memref<2x16xf32, #tpu.memory_space<smem>>
    %142 = vector.broadcast %141 : f32 to vector<1x64xf32>
    %143 = arith.mulf %142, %136 : vector<1x64xf32>
    %144 = arith.addf %135, %143 : vector<1x64xf32>
    %145 = tpu.concatenate %140, %144 in 1 : vector<1x64xf32>, vector<1x64xf32> -> vector<1x128xf32>
    %c0_82 = arith.constant 0 : index
    %c0_83 = arith.constant 0 : index
    %146 = vector.load %arg3[%c0_82, %c0_83] : memref<4x128xf32, #tpu.memory_space<vmem>>, vector<4x128xf32>
    %147 = vector.broadcast %145 : vector<1x128xf32> to vector<4x128xf32>
    %148 = arith.subf %147, %146 : vector<4x128xf32>
    %c0_84 = arith.constant 0 : index
    %c0_85 = arith.constant 0 : index
    %149 = vector.load %arg4[%c0_84, %c0_85] : memref<4x128xf32, #tpu.memory_space<vmem>>, vector<4x128xf32>
    tpu.vector_store %arg4[%c0_84, %c0_85], %148 {strides = array<i32>} : memref<4x128xf32, #tpu.memory_space<vmem>>, vector<4x128xf32>,
    return
  }
}

</mosaic_0001>

<bundles_post_ra>
// kernel: model_forward.1
= control target key start
LH: loop header
LB: loop body
LE: loop exit
PB: predicated region body
PF: predicated region fallthrough
CT: control target
= control target key end

     0   :  { %9 = vsyncpa [#allocation4], 0  ;;  %s329_s0 = inlined_call_operand.vmem [shape: f32[2,16], index: 0, kind: input, shape index: {}]   ;;  %s330_s1 = inlined_call_operand.hbm [shape: f32[16,64], index: 1, kind: input, shape index: {}]   ;;  %s331_s2 = inlined_call_operand.vmem [shape: f32[1,64], index: 2, kind: input, shape index: {}]   ;;  %s332_s3 = inlined_call_operand.vmem [shape: f32[4,128], index: 3, kind: input, shape index: {}, may-alias: {3,4}]   ;;  %s333_s4 = inlined_call_operand.vmem [shape: f32[4,128], index: 4, kind: output, shape index: {}, may-alias: {3,4}]  }
   0x1   :  { %s16_s17 = sshll.u32 %s329_s0, 4  ;;  %s17_s17 = int_to_ptr.vmem [resolvable:$true] %s16_s17 }
   0x2   :  { %10 = vsyncpa [#allocation3], 0  ;;  %s24_s20 = sshll.u32 %s330_s1, 4  ;;  %s284_s21 = smov [#allocation2]   ;;  %s25_s20 = int_to_ptr.hbm [resolvable:$true] %s24_s20 }
   0x3   :  { %19 = dma.vmem_to_smem %s17_s17, 32, %s284_s21, [#allocation4]  }
   0x4   :  { %s285_s22 = smov [#allocation5]   ;;  %s286_s24 = smov 128  }
   0x5   :  { %s26_s23 = sshll.u32 %s285_s22, 4  ;;  %s287_s25 = smov 8   ;;  %s27_s23 = int_to_ptr.vmem [resolvable:$true] %s26_s23 }
   0x6   :  { %32 = dma.hbm_to_vmem [thread:$0]  %s25_s20, 256, %s27_s23, [#allocation3], %s286_s24, %s286_s24, %s287_s25  }
   0x7   :  { %280 = dma.done.wait [#allocation4], 32  }
   0x8   :  { %281 = vsyncadd [#allocation4], 4294967264 }
   0x9   :  { %282 = dma.done.wait [#allocation3], 256  }
   0xa   :  { %283 = vsyncadd [#allocation3], 4294967040 }
   0xb   :  { %45 = sfence }
   0xc   :  { %s48_s0 = sld [smem:[#allocation2]]  ;;  %v47_v0 = vld [vmem:[#allocation5] sm:$0x1]  ;;  %v56_v5 = vld [vmem:[#allocation5 + $0x1] sm:$0x1]  ;;  %vm196_vm0 = vcmask 523264  }
   0xd   :  { %s208_s26 = sld [smem:[#allocation2 + $0x80]]  ;;  %v46_v2 = vld [vmem:[%s331_s2] sm:$0x1]  ;;  %v65_v11 = vld [vmem:[#allocation5 + $0x2] sm:$0x1] }
   0xe   :  { %s209_s27 = sld [smem:[#allocation2 + $0x1]]  ;;  %v74_v18 = vld [vmem:[#allocation5 + $0x3] sm:$0x1]  ;;  %v83_v25 = vld [vmem:[#allocation5 + $0x4] sm:$0x1] }
   0xf   :  { %s210_s28 = sld [smem:[#allocation2 + $0x81]]  ;;  %v92_v32 = vld [vmem:[#allocation5 + $0x5] sm:$0x1]  ;;  %v101_v39 = vld [vmem:[#allocation5 + $0x6] sm:$0x1] }
  0x10   :  { %s211_s29 = sld [smem:[#allocation2 + $0x2]]  ;;  %v110_v46 = vld [vmem:[#allocation5 + $0x7] sm:$0x1]  ;;  %v119_v53 = vld [vmem:[#allocation5 + $0x8] sm:$0x1] }
  0x11   :  { %s212_s1 = sld [smem:[#allocation2 + $0x82]]  ;;  %v128_v60 = vld [vmem:[#allocation5 + $0x9] sm:$0x1] }
  0x12   :  { %v49_v1 = vstv %s48_s0  ;;  %s213_s30 = sld [smem:[#allocation2 + $0x3]] }
  0x13   :  { %v50_v3 = vmul.f32 %v49_v1, %v47_v0  ;;  %v53_v4 = vstv %s208_s26  ;;  %s214_s7 = sld [smem:[#allocation2 + $0x83]] }
  0x14   :  { %v54_v6 = vmul.f32 %v53_v4, %v47_v0  ;;  %v58_v7 = vstv %s209_s27  ;;  %s215_s8 = sld [smem:[#allocation2 + $0x4]] }
  0x15   :  { %v51_v8 = vadd.f32 %v50_v3, %v46_v2  ;;  %v59_v9 = vmul.f32 %v58_v7, %v56_v5  ;;  %v62_v10 = vstv %s210_s28  ;;  %s216_s9 = sld [smem:[#allocation2 + $0x84]]  ;;  %v137_v3 = vld [vmem:[#allocation5 + $0xa] sm:$0x1] }
  0x16   :  { %v55_v12 = vadd.f32 %v54_v6, %v46_v2  ;;  %v63_v13 = vmul.f32 %v62_v10, %v56_v5  ;;  %v67_v14 = vstv %s211_s29  ;;  %s217_s10 = sld [smem:[#allocation2 + $0x5]]  ;;  %v146_v10 = vld [vmem:[#allocation5 + $0xb] sm:$0x1] }
  0x17   :  { %v60_v15 = vadd.f32 %v59_v9, %v51_v8  ;;  %v68_v16 = vmul.f32 %v67_v14, %v65_v11  ;;  %v71_v17 = vstv %s212_s1  ;;  %s218_s2 = sld [smem:[#allocation2 + $0x85]]  ;;  %s288_s1 = smov 64  }
  0x18   :  { %v64_v19 = vadd.f32 %v63_v13, %v55_v12  ;;  %v72_v20 = vmul.f32 %v71_v17, %v65_v11  ;;  %v76_v21 = vstv %s213_s30  ;;  %s219_s11 = sld [smem:[#allocation2 + $0x6]]  ;;  %v155_v17 = vld [vmem:[#allocation5 + $0xc] sm:$0x1] }
  0x19   :  { %v69_v22 = vadd.f32 %v68_v16, %v60_v15  ;;  %v77_v23 = vmul.f32 %v76_v21, %v74_v18  ;;  %v80_v24 = vstv %s214_s7  ;;  %s220_s12 = sld [smem:[#allocation2 + $0x86]] }
  0x1a   :  { %v73_v26 = vadd.f32 %v72_v20, %v64_v19  ;;  %v81_v27 = vmul.f32 %v80_v24, %v74_v18  ;;  %v85_v28 = vstv %s215_s8  ;;  %s221_s13 = sld [smem:[#allocation2 + $0x7]]  ;;  %v164_v24 = vld [vmem:[#allocation5 + $0xd] sm:$0x1] }
  0x1b   :  { %v78_v29 = vadd.f32 %v77_v23, %v69_v22  ;;  %v86_v30 = vmul.f32 %v85_v28, %v83_v25  ;;  %v89_v31 = vstv %s216_s9  ;;  %s222_s14 = sld [smem:[#allocation2 + $0x87]] }
  0x1c   :  { %v82_v33 = vadd.f32 %v81_v27, %v73_v26  ;;  %v90_v34 = vmul.f32 %v89_v31, %v83_v25  ;;  %v94_v35 = vstv %s217_s10  ;;  %s223_s15 = sld [smem:[#allocation2 + $0x8]]  ;;  %v173_v31 = vld [vmem:[#allocation5 + $0xe] sm:$0x1] }
  0x1d   :  { %v87_v36 = vadd.f32 %v86_v30, %v78_v29  ;;  %v95_v37 = vmul.f32 %v94_v35, %v92_v32  ;;  %v98_v38 = vstv %s218_s2  ;;  %s224_s16 = sld [smem:[#allocation2 + $0x88]] }
  0x1e   :  { %v91_v40 = vadd.f32 %v90_v34, %v82_v33  ;;  %v99_v41 = vmul.f32 %v98_v38, %v92_v32  ;;  %v103_v42 = vstv %s219_s11  ;;  %s225_s17 = sld [smem:[#allocation2 + $0x9]]  ;;  %v182_v38 = vld [vmem:[#allocation5 + $0xf] sm:$0x1] }
  0x1f   :  { %v96_v43 = vadd.f32 %v95_v37, %v87_v36  ;;  %v104_v44 = vmul.f32 %v103_v42, %v101_v39  ;;  %v107_v45 = vstv %s220_s12  ;;  %s226_s18 = sld [smem:[#allocation2 + $0x89]] }
  0x20   :  { %v100_v47 = vadd.f32 %v99_v41, %v91_v40  ;;  %v108_v48 = vmul.f32 %v107_v45, %v101_v39  ;;  %v112_v49 = vstv %s221_s13  ;;  %s227_s19 = sld [smem:[#allocation2 + $0xa]] }
  0x21   :  { %v105_v50 = vadd.f32 %v104_v44, %v96_v43  ;;  %v113_v51 = vmul.f32 %v112_v49, %v110_v46  ;;  %v116_v52 = vstv %s222_s14  ;;  %s228_s20 = sld [smem:[#allocation2 + $0x8a]] }
  0x22   :  { %v109_v54 = vadd.f32 %v108_v48, %v100_v47  ;;  %v117_v55 = vmul.f32 %v116_v52, %v110_v46  ;;  %v121_v56 = vstv %s223_s15  ;;  %s229_s21 = sld [smem:[#allocation2 + $0xb]]  ;;  %v198_v52 = vld [vmem:[%s332_s3] sm:$0xf] }
  0x23   :  { %v114_v57 = vadd.f32 %v113_v51, %v105_v50  ;;  %v122_v58 = vmul.f32 %v121_v56, %v119_v53  ;;  %v125_v59 = vstv %s224_s16  ;;  %s230_s22 = sld [smem:[#allocation2 + $0x8b]] }
  0x24   :  { %v118_v61 = vadd.f32 %v117_v55, %v109_v54  ;;  %v126_v62 = vmul.f32 %v125_v59, %v119_v53  ;;  %v130_v63 = vstv %s225_s17  ;;  %s231_s23 = sld [smem:[#allocation2 + $0xc]] }
  0x25   :  { %v123_v0 = vadd.f32 %v122_v58, %v114_v57  ;;  %v131_v1 = vmul.f32 %v130_v63, %v128_v60  ;;  %v134_v2 = vstv %s226_s18  ;;  %s232_s24 = sld [smem:[#allocation2 + $0x8c]] }
  0x26   :  { %v127_v4 = vadd.f32 %v126_v62, %v118_v61  ;;  %v135_v5 = vmul.f32 %v134_v2, %v128_v60  ;;  %v139_v6 = vstv %s227_s19  ;;  %s233_s25 = sld [smem:[#allocation2 + $0xd]] }
  0x27   :  { %v132_v7 = vadd.f32 %v131_v1, %v123_v0  ;;  %v140_v8 = vmul.f32 %v139_v6, %v137_v3  ;;  %v143_v9 = vstv %s228_s20  ;;  %s234_s0 = sld [smem:[#allocation2 + $0x8d]] }
  0x28   :  { %v136_v11 = vadd.f32 %v135_v5, %v127_v4  ;;  %v144_v12 = vmul.f32 %v143_v9, %v137_v3  ;;  %v148_v13 = vstv %s229_s21  ;;  %s235_s26 = sld [smem:[#allocation2 + $0xe]] }
  0x29   :  { %v141_v14 = vadd.f32 %v140_v8, %v132_v7  ;;  %v149_v15 = vmul.f32 %v148_v13, %v146_v10  ;;  %v152_v16 = vstv %s230_s22  ;;  %s236_s27 = sld [smem:[#allocation2 + $0x8e]] }
  0x2a   :  { %v145_v18 = vadd.f32 %v144_v12, %v136_v11  ;;  %v153_v19 = vmul.f32 %v152_v16, %v146_v10  ;;  %v157_v20 = vstv %s231_s23  ;;  %s237_s28 = sld [smem:[#allocation2 + $0xf]] }
  0x2b   :  { %v150_v21 = vadd.f32 %v149_v15, %v141_v14  ;;  %v158_v22 = vmul.f32 %v157_v20, %v155_v17  ;;  %v161_v23 = vstv %s232_s24  ;;  %s238_s29 = sld [smem:[#allocation2 + $0x8f]] }
  0x2c   :  { %v154_v25 = vadd.f32 %v153_v19, %v145_v18  ;;  %v162_v26 = vmul.f32 %v161_v23, %v155_v17  ;;  %v166_v27 = vstv %s233_s25 }
  0x2d   :  { %v159_v28 = vadd.f32 %v158_v22, %v150_v21  ;;  %v167_v29 = vmul.f32 %v166_v27, %v164_v24  ;;  %v170_v30 = vstv %s234_s0 }
  0x2e   :  { %v163_v32 = vadd.f32 %v162_v26, %v154_v25  ;;  %v171_v33 = vmul.f32 %v170_v30, %v164_v24  ;;  %v175_v34 = vstv %s235_s26 }
  0x2f   :  { %v168_v35 = vadd.f32 %v167_v29, %v159_v28  ;;  %v176_v36 = vmul.f32 %v175_v34, %v173_v31  ;;  %v179_v37 = vstv %s236_s27 }
  0x30   :  { %v172_v39 = vadd.f32 %v171_v33, %v163_v32  ;;  %v180_v40 = vmul.f32 %v179_v37, %v173_v31  ;;  %v184_v41 = vstv %s237_s28 }
  0x31   :  { %v177_v42 = vadd.f32 %v176_v36, %v168_v35  ;;  %v185_v43 = vmul.f32 %v184_v41, %v182_v38  ;;  %v188_v44 = vstv %s238_s29 }
  0x32   :  { %v181_v45 = vadd.f32 %v180_v40, %v172_v39  ;;  %v189_v46 = vmul.f32 %v188_v44, %v182_v38 }
  0x33   :  { %v186_v47 = vadd.f32 %v185_v43, %v177_v42 }
  0x34   :  { %v190_v48 = vadd.f32 %v189_v46, %v181_v45 }
  0x36   :  { %v192_v49 = vperm.slane %v190_v48, 0 }
  0x38   :  { %193 = vrot.lane.b32.xlu0 %v192_v49, %s288_s1 }
  0xaa   :  { %v194_v50 = vpop.permute.xlu0 %193 }
  0xab   :  { %v197_v51 = vsel %vm196_vm0, %v186_v47, %v194_v50 }
  0xac   :  { %v199_v53 = vperm.slane %v197_v51, 0 }
  0xae   :  { %v200_v54 = vsub.f32 %v199_v53, %v198_v52 }
  0xb0   :  { %201 = vst [vmem:[%s333_s4] sm:$0xf] %v200_v54 }
  0xb1   :  { %206 = vsyncpa [#allocation3], 1 }
  0xb2   :  { %207 = vsyncpa [#allocation4], 1 }

</bundles_post_ra>
